<compile_context>
chip_gen: v7x
topology: tpu7x:2x2x1
jax: 0.10.0
libtpu: 0.0.40
codegen_flags: <defaults>
</compile_context>

<pallas_src>
import functools
import math

import jax
import jax.numpy as jnp
from jax.experimental import pallas as pl
from jax.experimental.pallas import tpu as pltpu

BN_EPS = 1e-5


def _round_up(x, m):
    return (x + m - 1) // m * m


# ----------------------------------------------------------------------------
# Pallas kernels
# ----------------------------------------------------------------------------
def _mm_kernel(x_ref, w_ref, b_ref, *rest, use_prelu, use_residual, single_k):
    """bf16 x @ bf16 w -> f32 acc, fused bias (+PReLU) (+residual) epilogue."""
    idx = 0
    a_ref = r_ref = None
    if use_prelu:
        a_ref = rest[idx]; idx += 1
    if use_residual:
        r_ref = rest[idx]; idx += 1
    o_ref = rest[idx]; idx += 1

    def epilogue(acc):
        y = acc + b_ref[...]
        if use_prelu:
            y = jnp.where(y >= 0.0, y, y * a_ref[...])
        if use_residual:
            y = y + r_ref[...]
        return y.astype(o_ref.dtype)

    if single_k:
        acc = jnp.dot(x_ref[...], w_ref[...], preferred_element_type=jnp.float32)
        o_ref[...] = epilogue(acc)
    else:
        acc_ref = rest[idx]
        k = pl.program_id(2)

        @pl.when(k == 0)
        def _():
            acc_ref[...] = jnp.zeros_like(acc_ref)

        acc_ref[...] += jnp.dot(x_ref[...], w_ref[...],
                                preferred_element_type=jnp.float32)

        @pl.when(k == pl.num_programs(2) - 1)
        def _():
            o_ref[...] = epilogue(acc_ref[...])


def _prelu_kernel(x_ref, a_ref, o_ref):
    x = x_ref[...]
    o_ref[...] = jnp.where(x >= 0.0, x, x * a_ref[...])


# ----------------------------------------------------------------------------
# Tile selection
# ----------------------------------------------------------------------------
def _choose_tm(M):
    # Largest row tile <= 512 that divides M (multiple of 16 for bf16 packing);
    # small M gets a single (rounded-up) tile instead of a 128-row pad.
    if M <= 512:
        return _round_up(M, 16)
    for tm in range(512, 15, -16):
        if M % tm == 0:
            return tm
    return 128


def _choose_tk(K):
    # Full-K block (no padding, no accumulator revisit) whenever it fits
    # comfortably in VMEM; otherwise split K into 128-aligned chunks.
    if K <= 4608:
        return K, K
    for tk in range(4096, 127, -128):
        if K % tk == 0:
            return tk, K
    return 2048, _round_up(K, 2048)


# ----------------------------------------------------------------------------
# Fused matmul wrapper
# ----------------------------------------------------------------------------
@jax.jit
def matmul_fused(x, w, bias, alpha=None, residual=None):
    """y[:M] = (x @ w) + bias (+PReLU(alpha)) (+residual). bf16 MXU, f32 acc."""
    M, K = x.shape
    Np = w.shape[1]
    assert Np % 128 == 0  # all weights are padded to lane-dense outputs
    tm = _choose_tm(M)
    Mp = _round_up(M, tm)
    tk, Kp = _choose_tk(K)
    i_steps = Mp // tm
    tn = 256 if (Np % 256 == 0 and i_steps >= 2) else 128
    k_steps = Kp // tk
    single_k = k_steps == 1

    xb = x.astype(jnp.bfloat16)
    wb = w.astype(jnp.bfloat16)
    if Mp != M:
        xb = jnp.pad(xb, ((0, Mp - M), (0, 0)))
    if Kp != K:
        xb = jnp.pad(xb, ((0, 0), (0, Kp - K)))
        wb = jnp.pad(wb, ((0, Kp - K), (0, 0)))

    use_prelu = alpha is not None
    use_residual = residual is not None

    if single_k:
        x_spec = pl.BlockSpec((tm, tk), lambda i, j: (i, 0))
        w_spec = pl.BlockSpec((tk, tn), lambda i, j: (0, j))
        vec_spec = pl.BlockSpec((1, tn), lambda i, j: (0, j))
        mn_spec = pl.BlockSpec((tm, tn), lambda i, j: (i, j))
        grid = (i_steps, Np // tn)
        dim_sem = ("parallel", "parallel")
        scratch = []
    else:
        x_spec = pl.BlockSpec((tm, tk), lambda i, j, k: (i, k))
        w_spec = pl.BlockSpec((tk, tn), lambda i, j, k: (k, j))
        vec_spec = pl.BlockSpec((1, tn), lambda i, j, k: (0, j))
        mn_spec = pl.BlockSpec((tm, tn), lambda i, j, k: (i, j))
        grid = (i_steps, Np // tn, k_steps)
        dim_sem = ("parallel", "parallel", "arbitrary")
        scratch = [pltpu.VMEM((tm, tn), jnp.float32)]

    inputs = [xb, wb, bias.reshape(1, Np).astype(jnp.float32)]
    in_specs = [x_spec, w_spec, vec_spec]
    if use_prelu:
        inputs.append(alpha.reshape(1, Np).astype(jnp.float32))
        in_specs.append(vec_spec)
    if use_residual:
        res = residual.astype(jnp.float32)
        if Mp != M:
            res = jnp.pad(res, ((0, Mp - M), (0, 0)))
        inputs.append(res)
        in_specs.append(mn_spec)

    kernel = functools.partial(_mm_kernel, use_prelu=use_prelu,
                               use_residual=use_residual, single_k=single_k)
    out = pl.pallas_call(
        kernel,
        out_shape=jax.ShapeDtypeStruct((Mp, Np), jnp.float32),
        grid_spec=pltpu.PrefetchScalarGridSpec(
            num_scalar_prefetch=0,
            grid=grid,
            in_specs=in_specs,
            out_specs=mn_spec,
            scratch_shapes=scratch,
        ),
        compiler_params=pltpu.CompilerParams(
            dimension_semantics=dim_sem,
            vmem_limit_bytes=32 * 1024 * 1024),
    )(*inputs)
    return out[:M] if Mp != M else out


@jax.jit
def prelu_rows(x, alpha):
    """Per-feature PReLU over the last dim of a (M, C) tensor."""
    M, C = x.shape
    Mp = _round_up(M, 8)
    xp = jnp.pad(x, ((0, Mp - M), (0, 0))) if Mp != M else x
    out = pl.pallas_call(
        _prelu_kernel,
        out_shape=jax.ShapeDtypeStruct((Mp, C), jnp.float32),
        grid=(1,),
        in_specs=[pl.BlockSpec((Mp, C), lambda i: (0, 0)),
                  pl.BlockSpec((1, C), lambda i: (0, 0))],
        out_specs=pl.BlockSpec((Mp, C), lambda i: (0, 0)),
    )(xp, alpha.reshape(1, C))
    return out[:M] if Mp != M else out


# ----------------------------------------------------------------------------
# Conv glue: bf16 im2col (fused by XLA inside the per-layer jit) + Pallas matmul
# ----------------------------------------------------------------------------
@functools.partial(jax.jit, static_argnames=("ksize", "stride", "pad", "cout"))
def conv2d_fused(x_nhwc, wmat, bias, *, ksize, stride, pad, cout,
                 alpha=None, residual=None):
    B, H, W, C = x_nhwc.shape
    OH = (H + 2 * pad - ksize) // stride + 1
    OW = (W + 2 * pad - ksize) // stride + 1
    Np = wmat.shape[1]

    xb = x_nhwc.astype(jnp.bfloat16)
    if pad:
        xb = jnp.pad(xb, ((0, 0), (pad, pad), (pad, pad), (0, 0)))
    if ksize == 1:
        patches = xb[:, :stride * OH:stride, :stride * OW:stride, :]
        patches = patches.reshape(B * OH * OW, C)
    else:
        cols = [xb[:, i:i + stride * OH:stride, j:j + stride * OW:stride, :]
                for i in range(ksize) for j in range(ksize)]
        patches = jnp.concatenate(cols, axis=-1)
        patches = patches.reshape(B * OH * OW, ksize * ksize * C)
    # TODO(synk): patches are still materialized in HBM (now in bf16); a direct
    # NHWC conv kernel that DMAs row bands would remove the remaining 9x read
    # amplification.

    res = None
    if residual is not None:
        res = residual.reshape(B * OH * OW, residual.shape[-1])
        if res.shape[-1] != Np:
            res = jnp.pad(res, ((0, 0), (0, Np - res.shape[-1])))

    y = matmul_fused(patches, wmat, bias, alpha=alpha, residual=res)
    if Np != cout:
        y = y[:, :cout]
    return y.reshape(B, OH, OW, cout)


# ----------------------------------------------------------------------------
# Parameter init (deterministic, mirrors Backbone._initialize_weights) + folding
# ----------------------------------------------------------------------------
def _kaiming_normal(key, shape, fan_out):
    std = math.sqrt(2.0 / fan_out)
    return std * jax.random.normal(key, shape, dtype=jnp.float32)


def _init_conv(key, oc, ic, kh, kw):
    return _kaiming_normal(key, (oc, ic, kh, kw), oc * kh * kw)


def _bn_fold(c):
    # eval-mode BN with weight=1, bias=0, running_mean=0, running_var=1
    scale = jnp.full((c,), 1.0 / math.sqrt(1.0 + BN_EPS), jnp.float32)
    shift = jnp.zeros((c,), jnp.float32)
    return scale, shift


def _pad_vec(v, n):
    return v if v.shape[0] == n else jnp.pad(v, (0, n - v.shape[0]))


def _fold_conv(w_oihw, pre_scale=None, pre_bias=None,
               post_scale=None, post_bias=None, out_pad=None):
    """Fold pre-conv / post-conv BN affines into an im2col weight matrix."""
    OC, IC, KH, KW = w_oihw.shape
    wmat = jnp.transpose(w_oihw, (2, 3, 1, 0)).reshape(KH * KW * IC, OC)
    wmat = wmat.astype(jnp.float32)
    bias = jnp.zeros((OC,), jnp.float32)
    if pre_bias is not None:
        # TODO(synk): exact only because the folded pre-BN bias is zero under
        # _initialize_weights; nonzero bias would differ at zero-padded borders.
        bias = bias + (wmat * jnp.tile(pre_bias, KH * KW)[:, None]).sum(axis=0)
    if pre_scale is not None:
        wmat = wmat * jnp.tile(pre_scale, KH * KW)[:, None]
    if post_scale is not None:
        wmat = wmat * post_scale[None, :]
        bias = bias * post_scale
    if post_bias is not None:
        bias = bias + post_bias
    if out_pad is not None and out_pad > OC:
        wmat = jnp.pad(wmat, ((0, 0), (0, out_pad - OC)))
        bias = jnp.pad(bias, ((0, out_pad - OC),))
    return wmat.astype(jnp.bfloat16), bias.astype(jnp.float32)


def _block_configs():
    cfg = []

    def add_stage(in_c, depth, num):
        cfg.append((in_c, depth, 2))
        for _ in range(num - 1):
            cfg.append((depth, depth, 1))

    add_stage(64, 64, 3)
    add_stage(64, 128, 4)
    add_stage(128, 256, 14)
    add_stage(256, 512, 3)
    return cfg


def init_params(key):
    keys = iter(jax.random.split(key, 160))
    p = {}

    # input_layer: Conv2d(3,64,3,1,1) -> BN(64) -> PReLU(64)
    w = _init_conv(next(keys), 64, 3, 3, 3)
    s, b = _bn_fold(64)
    p['input_w'], p['input_b'] = _fold_conv(w, post_scale=s, post_bias=b,
                                            out_pad=128)
    p['input_alpha'] = _pad_vec(jnp.full((64,), 0.25, jnp.float32), 128)

    blocks = []
    for (in_c, depth, stride) in _block_configs():
        bp = {}
        npad = _round_up(depth, 128)
        # res branch: BN(in) -> Conv3x3 -> PReLU -> Conv3x3(stride) -> BN
        s1, b1 = _bn_fold(in_c)
        w1 = _init_conv(next(keys), depth, in_c, 3, 3)
        bp['conv1_w'], bp['conv1_b'] = _fold_conv(w1, pre_scale=s1, pre_bias=b1,
                                                  out_pad=npad)
        bp['prelu'] = _pad_vec(jnp.full((depth,), 0.25, jnp.float32), npad)
        w2 = _init_conv(next(keys), depth, depth, 3, 3)
        s2, b2 = _bn_fold(depth)
        bp['conv2_w'], bp['conv2_b'] = _fold_conv(w2, post_scale=s2,
                                                  post_bias=b2, out_pad=npad)
        if in_c != depth:
            wsc = _init_conv(next(keys), depth, in_c, 1, 1)
            ss, sb = _bn_fold(depth)
            bp['sc_w'], bp['sc_b'] = _fold_conv(wsc, post_scale=ss,
                                                post_bias=sb, out_pad=npad)
        blocks.append(bp)
    p['blocks'] = blocks

    # output_layer: Flatten -> PReLU(25088) -> Dropout -> Linear(25088, 512)
    feat = 512 * 7 * 7
    p['out_prelu'] = jnp.full((feat,), 0.25, jnp.float32)
    fc_w = _kaiming_normal(next(keys), (512, feat), 512)
    p['fc_w_t'] = jnp.transpose(fc_w).astype(jnp.bfloat16)   # pre-transposed
    p['fc_b'] = jnp.zeros((512,), jnp.float32)
    return p


# ----------------------------------------------------------------------------
# Forward pass (use_type='Rec')
# ----------------------------------------------------------------------------
def backbone_forward(params, x_nchw):
    x = jnp.transpose(x_nchw, (0, 2, 3, 1)).astype(jnp.float32)  # NHWC

    # input_layer (BN folded into the conv weights, PReLU fused in epilogue)
    x = conv2d_fused(x, params['input_w'], params['input_b'],
                     ksize=3, stride=1, pad=1, cout=64,
                     alpha=params['input_alpha'])

    # body: bottleneck_IR blocks
    for bp, (in_c, depth, stride) in zip(params['blocks'], _block_configs()):
        # shortcut branch
        if in_c == depth:
            # MaxPool2d(kernel=1, stride) == strided subsampling
            sc = x if stride == 1 else x[:, ::stride, ::stride, :]
        else:
            sc = conv2d_fused(x, bp['sc_w'], bp['sc_b'],
                              ksize=1, stride=stride, pad=0, cout=depth)
        # res branch: BN(in)[folded] -> Conv3x3 -> PReLU -> Conv3x3(stride) ->
        # BN[folded] -> + shortcut (residual fused into the conv2 epilogue)
        r = conv2d_fused(x, bp['conv1_w'], bp['conv1_b'],
                         ksize=3, stride=1, pad=1, cout=depth,
                         alpha=bp['prelu'])
        x = conv2d_fused(r, bp['conv2_w'], bp['conv2_b'],
                         ksize=3, stride=stride, pad=1, cout=depth,
                         residual=sc)

    # output_layer: Flatten (NCHW order) -> PReLU(25088) -> Dropout -> Linear
    B = x.shape[0]
    flat = jnp.transpose(x, (0, 3, 1, 2)).reshape(B, -1)  # match torch .view
    flat = prelu_rows(flat, params['out_prelu'])
    # TODO(synk): Dropout(0.5) is identity in eval mode; train-mode dropout not implemented.
    y = matmul_fused(flat, params['fc_w_t'], params['fc_b'])
    return y


if __name__ == "__main__":
    key = jax.random.PRNGKey(0)
    pkey, xkey = jax.random.split(key)
    params = init_params(pkey)
    # Backbone requires 112x112 RGB input (the Linear layer expects 512*7*7).
    x = jax.random.normal(xkey, (2, 3, 112, 112), dtype=jnp.float32)
    out = backbone_forward(params, x)
    out = jax.block_until_ready(out)
    assert out.shape == (2, 512), out.shape
    assert bool(jnp.all(jnp.isfinite(out)))
    print("KERNEL_OK")
</pallas_src>

<mosaic_0001>
module attributes {stable_mosaic.version = 11 : i64} {
  func.func @_mm_kernel(%arg0: i32, %arg1: i32, %arg2: memref<512x27xbf16, #tpu.memory_space<vmem>>, %arg3: memref<27x128xbf16, #tpu.memory_space<vmem>>, %arg4: memref<1x128xf32, #tpu.memory_space<vmem>>, %arg5: memref<1x128xf32, #tpu.memory_space<vmem>>, %arg6: memref<512x128xf32, #tpu.memory_space<vmem>>) attributes {dimension_semantics = [#tpu.dimension_semantics<parallel>, #tpu.dimension_semantics<parallel>], iteration_bounds = array<i64: 49, 1>, scalar_prefetch = 0 : i64, scratch_operands = 0 : i64, tpu.core_type = #tpu.core_type<tc>, window_params = [{transform_indices = @transform_0, window_bounds = array<i64: 512, 27>}, {transform_indices = @transform_1, window_bounds = array<i64: 27, 128>}, {transform_indices = @transform_2, window_bounds = array<i64: 1, 128>}, {transform_indices = @transform_3, window_bounds = array<i64: 1, 128>}, {transform_indices = @transform_4, window_bounds = array<i64: 512, 128>}]} {
    %c0 = arith.constant 0 : index
    %c0_0 = arith.constant 0 : index
    %0 = vector.load %arg2[%c0, %c0_0] : memref<512x27xbf16, #tpu.memory_space<vmem>>, vector<512x27xbf16>
    %c0_1 = arith.constant 0 : index
    %c0_2 = arith.constant 0 : index
    %1 = vector.load %arg3[%c0_1, %c0_2] : memref<27x128xbf16, #tpu.memory_space<vmem>>, vector<27x128xbf16>
    %cst = arith.constant dense<0.000000e+00> : vector<512x128xf32>
    %2 = tpu.matmul %0, %1, %cst {dimension_numbers = #tpu.dot_dimension_numbers<[1], [0], [0], [1], [0, 0, 1, 1], [], []>} : vector<512x27xbf16>, vector<27x128xbf16>, vector<512x128xf32> -> vector<512x128xf32>
    %c0_3 = arith.constant 0 : index
    %c0_4 = arith.constant 0 : index
    %3 = vector.load %arg4[%c0_3, %c0_4] : memref<1x128xf32, #tpu.memory_space<vmem>>, vector<1x128xf32>
    %4 = vector.broadcast %3 : vector<1x128xf32> to vector<512x128xf32>
    %5 = arith.addf %2, %4 : vector<512x128xf32>
    %cst_5 = arith.constant 0.000000e+00 : f32
    %6 = vector.broadcast %cst_5 : f32 to vector<512x128xf32>
    %7 = arith.cmpf oge, %5, %6 : vector<512x128xf32>
    %c0_6 = arith.constant 0 : index
    %c0_7 = arith.constant 0 : index
    %8 = vector.load %arg5[%c0_6, %c0_7] : memref<1x128xf32, #tpu.memory_space<vmem>>, vector<1x128xf32>
    %9 = vector.broadcast %8 : vector<1x128xf32> to vector<512x128xf32>
    %10 = arith.mulf %5, %9 : vector<512x128xf32>
    %11 = arith.select %7, %5, %10 : vector<512x128xi1>, vector<512x128xf32>
    %c0_8 = arith.constant 0 : index
    %c0_9 = arith.constant 0 : index
    %12 = vector.load %arg6[%c0_8, %c0_9] : memref<512x128xf32, #tpu.memory_space<vmem>>, vector<512x128xf32>
    tpu.vector_store %arg6[%c0_8, %c0_9], %11 {strides = array<i32>} : memref<512x128xf32, #tpu.memory_space<vmem>>, vector<512x128xf32>,
    return
  }
  func.func @transform_0(%arg0: i32, %arg1: i32) -> (i32, i32) {
    %c0_i32 = arith.constant 0 : i32
    %c0_i32_0 = arith.constant 0 : i32
    return %arg0, %c0_i32 : i32, i32
  }
  func.func @transform_1(%arg0: i32, %arg1: i32) -> (i32, i32) {
    %c0_i32 = arith.constant 0 : i32
    %c0_i32_0 = arith.constant 0 : i32
    return %c0_i32, %arg1 : i32, i32
  }
  func.func @transform_2(%arg0: i32, %arg1: i32) -> (i32, i32) {
    %c0_i32 = arith.constant 0 : i32
    %c0_i32_0 = arith.constant 0 : i32
    return %c0_i32, %arg1 : i32, i32
  }
  func.func @transform_3(%arg0: i32, %arg1: i32) -> (i32, i32) {
    %c0_i32 = arith.constant 0 : i32
    %c0_i32_0 = arith.constant 0 : i32
    return %c0_i32, %arg1 : i32, i32
  }
  func.func @transform_4(%arg0: i32, %arg1: i32) -> (i32, i32) {
    %c0_i32 = arith.constant 0 : i32
    return %arg0, %arg1 : i32, i32
  }
}

</mosaic_0001>

<bundles_post_ra>
// kernel: matmul_fused.1
= control target key start
LH: loop header
LB: loop body
LE: loop exit
PB: predicated region body
PF: predicated region fallthrough
CT: control target
= control target key end

     0   :  { %9 = vsyncpa [#allocation3], 0  ;;  %s2084_s0 = inlined_call_operand.vmem [shape: bf16[25088,27], index: 0, kind: input, shape index: {}]   ;;  %s2085_s1 = inlined_call_operand.vmem [shape: bf16[27,128], index: 1, kind: input, shape index: {}]   ;;  %s2086_s2 = inlined_call_operand.vmem [shape: f32[1,128], index: 2, kind: input, shape index: {}]   ;;  %s2087_s3 = inlined_call_operand.vmem [shape: f32[1,128], index: 3, kind: input, shape index: {}]   ;;  %s2088_s4 = inlined_call_operand.hbm [shape: f32[25088,128], index: 4, kind: output, shape index: {}]  }
   0x1   :  { %11 = vsyncpa [#allocation3 + $0x1], 0  ;;  %s1679_s15 = smov 0   ;;  %s1681_s16 = smov 0  }
   0x2   :  { %s1683_s17 = smov 0   ;;  %s1685_s18 = smov 0  }
   0x3   :  { %s1687_s19 = smov 0   ;;  %s1689_s20 = smov 0  }
   0x4 LB: > { %s1287_s21 = sadd.s32 4294967295, %s1648_s20   ;;  %s1288_s22 = sadd.s32 4294967294, %s1648_s20   ;;  %s1648_s20 = sphi %s1689_s20, %s17_s20   ;;  %s1644_s19 = sphi %s1687_s19, %s2095_s19   ;;  %s1640_s18 = sphi %s1685_s18, %s2094_s18   ;;  %s1636_s17 = sphi %s1683_s17, %s2093_s17   ;;  %s1632_s16 = sphi %s1681_s16, %s2092_s16   ;;  %s1628_s15 = sphi %s1679_s15, %s2091_s15  }
   0x5   : > { %s29_s23 = sadd.s32 1, %s1644_s19  ;;  %s142_s24 = sadd.s32 1, %s1636_s17 }
   0x6   : > { %p31_p0 = scmp.ge.s32.totalorder %s29_s23, 49  ;;  %p152_p1 = scmp.ne.s32.totalorder %s1636_s17, %s1632_s16 }
   0x7   : > { %p153_p2 = scmp.eq.s32.totalorder %s1287_s21, 48  ;;  %p158_p3 = scmp.ne.s32.totalorder %s1632_s16, %s1628_s15 }
   0x8   : > { %s2097_s23 = smov (%p31_p0, %s29_s23), 0  ;;  %p159_p5 = scmp.eq.s32.totalorder %s1288_s22, 48 }
   0x9   : > { %p1719_p4 = por %p153_p2, %p152_p1  ;;  %s137_s26 = ssub.s32 %s1644_s19, %s2097_s23 }
   0xa   : > { %p1294_p6 = scmp.ge.s32.totalorder %s1648_s20, 1  ;;  %p140_p7 = scmp.eq.s32.totalorder %s137_s26, 0 }
   0xb   : > { %p1726_p8 = por %p159_p5, %p158_p3  ;;  %p205_p9 = scmp.lt.s32.totalorder %s1648_s20, 50 }
   0xc   : > { %s1732_s28 = scalar_select %p140_p7, %s1636_s17, %s142_s24  }
   0xd   : > { %p206_p10 = pnand %p1294_p6, %p205_p9 }
   0xe   : > { %v1536_v0 = vld [vmem:[%s2085_s1] sm:$0xff] (!%p206_p10)   ;;  %vm602_vm0 = vcmask (!%p206_p10), 1044480   ;;  %v1537_v1 = vld [vmem:[%s2085_s1 + $0x8] sm:$0x3f] (!%p206_p10)   ;;  %vm603_vm1 = vcmask (!%p206_p10), 1045504   ;;  %s1296_s7 = sshll.u32 (!%p206_p10), %s1640_s18, 6 }
   0xf   : > { %209 = sbr.rel (%p206_p10) target bundleno = 322 (0x142), region = 36  ;;  %1406 = vmatprep.subr.bf16.mxu0 (!%p206_p10), %v1536_v0  ;;  %1474 = vmatprep.subr.bf16.mxu1 (!%p206_p10), %v1536_v0  ;;  %v1650_v2 = vmov (!%p206_p10), 65535   ;;  %p242_p11 = scmp.lt.s32.totalorder (!%p206_p10), %s1296_s7, 3135  ;;  %vm505_vm2 = vcmask (!%p206_p10), 220160   ;;  %v1814_v38 = vld [vmem:[%s2086_s2] ss:$0 sm:$0xff] (!%p206_p10) }
  0x10   : > { %1407 = vmatpush3.bf16.msra.mxu0 (!%p206_p10), %v1536_v0  ;;  %1476 = vmatpush3.bf16.msra.mxu1 (!%p206_p10), %v1536_v0  ;;  %v604_v3 = vsel (!%p206_p10), %vm602_vm0, 4294967295, %v1650_v2  ;;  %s238_s12 = sand.u32 (!%p206_p10), 1, %s1632_s16   ;;  %v1821_v40 = vld [vmem:[%s2087_s3] ss:$0 sm:$0xff] (!%p206_p10)  ;;  %s1371_s29 = sshll.u32 (!%p206_p10), %s1640_s18, 13 }
  0x11   : > { %v605_v4 = vsel (!%p206_p10), %vm603_vm1, %v604_v3, 0  ;;  %s1295_s21 = sshll.u32 (!%p206_p10), %s238_s12, 9  ;;  %s2028_s6 = scalar_lea.hbm (!%p206_p10), %s2088_s4, %s1371_s29 }
  0x12   : > { %v607_v5 = vand.u32 (!%p206_p10), %v1537_v1, %v605_v4  ;;  %s1832_s26 = scalar_lea.vmem (!%p206_p10), [#allocation2], %s1295_s21  ;;  %s1651_s9 = smov (!%p206_p10), [#allocation2]  }
  0x13   : > { %s1176_s30 = sshll.u32 (!%p206_p10), %s1832_s26, 4  ;;  %s1574_s10 = sshll.u32 (!%p206_p10), %s1651_s9, 4  ;;  %s2030_s30 = int_to_ptr.vmem [resolvable:$true] %s1176_s30  ;;  %s1575_s10 = int_to_ptr.vmem [resolvable:$false] %s1574_s10 }
  0x14   : > { %1408 = vmatprep.subr.bf16.mxu0 (!%p206_p10), %v607_v5  ;;  %1475 = vmatprep.subr.bf16.mxu1 (!%p206_p10), %v607_v5  ;;  %p1577_p1 = scmp.lt.s32.totalorder (!%p206_p10), %s2030_s30, %s1575_s10 }
  0x15   : > { %1409 = vmatpush3.bf16.msra.mxu0 (!%p206_p10), %v607_v5  ;;  %1477 = vmatpush3.bf16.msra.mxu1 (!%p206_p10), %v607_v5 }
  0x16   : > { %s2099_s7 = smov (!%p242_p11, %s1296_s7), 3135 }
  0x17   : > { %s1297_s8 = sshll.u32 %s2099_s7, 2  ;;  %s2038_s7 = scalar_lea.sflag [#allocation3], %s238_s12 }
  0x18   : > { %s1744_s11 = scalar_lea.vmem %s2084_s0, %s1297_s8  ;;  %s1570_s8 = scalar_lea.vmem %s2030_s30, 8192 }
  0x19   : > { %v1538_v6 = vld [vmem:[%s1744_s11] sm:$0xff]   ;;  %v1540_v8 = vld [vmem:[%s1744_s11 + $0x8] sm:$0xff]   ;;  %v1542_v10 = vld [vmem:[%s1744_s11 + $0x10] sm:$0xff]   ;;  %p1571_p12 = scmp.ne.s32.totalorder %s2030_s30, %s1570_s8 }
  0x1a   : > { %v1539_v7 = vld [vmem:[%s1744_s11 + $0x80] sm:$0xff]   ;;  %1410 = vmatprep.mubr.msk.bf16.mxu0 %vm505_vm2, %v1538_v6  ;;  %v1541_v9 = vld [vmem:[%s1744_s11 + $0x88] sm:$0xff]   ;;  %v1543_v11 = vld [vmem:[%s1744_s11 + $0x90] sm:$0xff]  }
  0x1b   : > { %1442 = vmatprep.mubr.msk.bf16.mxu1 %vm505_vm2, %v1539_v7  ;;  %1411 = vmatmul.mubr.msk.bf16.vlgmr.msra.gmra.mrb[0].mxu0 %vm505_vm2, %v1540_v8  ;;  %v1544_v12 = vld [vmem:[%s1744_s11 + $0x18] sm:$0xff]   ;;  %v1546_v14 = vld [vmem:[%s1744_s11 + $0x20] sm:$0xff]   ;;  %v1548_v16 = vld [vmem:[%s1744_s11 + $0x28] sm:$0xff]   ;;  %p1572_p13 = pnand %p1571_p12, %p1719_p4 }
  0x1c   : > { %1443 = vmatmul.mubr.msk.bf16.vlgmr.msra.gmra.mrb[0].mxu1 %vm505_vm2, %v1541_v9  ;;  %1414 = vmatprep.mubr.msk.bf16.mxu0 %vm505_vm2, %v1542_v10  ;;  %v1545_v13 = vld [vmem:[%s1744_s11 + $0x98] sm:$0xff]   ;;  %v1547_v15 = vld [vmem:[%s1744_s11 + $0xa0] sm:$0xff]   ;;  %v1549_v17 = vld [vmem:[%s1744_s11 + $0xa8] sm:$0xff]  }
  0x1d   : > { %1446 = vmatprep.mubr.msk.bf16.mxu1 %vm505_vm2, %v1543_v11  ;;  %v1550_v18 = vld [vmem:[%s1744_s11 + $0x30] sm:$0xff]   ;;  %v1552_v20 = vld [vmem:[%s1744_s11 + $0x38] sm:$0xff]   ;;  %v1554_v22 = vld [vmem:[%s1744_s11 + $0x40] sm:$0xff]   ;;  %p1573_p0 = pneg %p1572_p13 }
  0x1e   : > { %v1551_v19 = vld [vmem:[%s1744_s11 + $0xb0] sm:$0xff]   ;;  %v1553_v21 = vld [vmem:[%s1744_s11 + $0xb8] sm:$0xff]   ;;  %v1555_v23 = vld [vmem:[%s1744_s11 + $0xc0] sm:$0xff]  }
  0x1f   : > { %v1556_v24 = vld [vmem:[%s1744_s11 + $0x48] sm:$0xff]   ;;  %v1558_v26 = vld [vmem:[%s1744_s11 + $0x50] sm:$0xff]   ;;  %v1560_v28 = vld [vmem:[%s1744_s11 + $0x58] sm:$0xff]  }
  0x20   : > { %v1557_v25 = vld [vmem:[%s1744_s11 + $0xc8] sm:$0xff]   ;;  %v1559_v27 = vld [vmem:[%s1744_s11 + $0xd0] sm:$0xff]   ;;  %v1561_v29 = vld [vmem:[%s1744_s11 + $0xd8] sm:$0xff]  }
  0x21   : > { %v1562_v30 = vld [vmem:[%s1744_s11 + $0x60] sm:$0xff]   ;;  %v1564_v32 = vld [vmem:[%s1744_s11 + $0x68] sm:$0xff]   ;;  %v1566_v34 = vld [vmem:[%s1744_s11 + $0x70] sm:$0xff]  }
  0x22   : > { %v1563_v31 = vld [vmem:[%s1744_s11 + $0xe0] sm:$0xff]   ;;  %v1565_v33 = vld [vmem:[%s1744_s11 + $0xe8] sm:$0xff]   ;;  %v1567_v35 = vld [vmem:[%s1744_s11 + $0xf0] sm:$0xff]  }
  0x23   : > { %1415 = vmatmul.mubr.msk.bf16.gmra.mrb[4].mxu0 %vm505_vm2, %v1544_v12  ;;  %v1568_v36 = vld [vmem:[%s1744_s11 + $0x78] sm:$0xff]  }
  0x24   : > { %1447 = vmatmul.mubr.msk.bf16.gmra.mrb[4].mxu1 %vm505_vm2, %v1545_v13  ;;  %1418 = vmatprep.mubr.msk.bf16.mxu0 %vm505_vm2, %v1546_v14  ;;  %v1569_v37 = vld [vmem:[%s1744_s11 + $0xf8] sm:$0xff]   ;;  %s1576_s11 = scalar_lea.vmem %s1575_s10, 16384 }
  0x25   : > { %1450 = vmatprep.mubr.msk.bf16.mxu1 %vm505_vm2, %v1547_v15  ;;  %p1578_p2 = scmp.lt.s32.totalorder %s1576_s11, %s1570_s8 }
  0x27   : > { %p1579_p3 = por %p1578_p2, %p1577_p1 }
  0x29   : > { %p1580_p5 = pnand %p1579_p3, %p1573_p0 }
  0x2b   : > { %1419 = vmatmul.mubr.msk.bf16.gmra.mrb[8].mxu0 %vm505_vm2, %v1548_v16 }
  0x2c   : > { %1451 = vmatmul.mubr.msk.bf16.gmra.mrb[8].mxu1 %vm505_vm2, %v1549_v17  ;;  %1422 = vmatprep.mubr.msk.bf16.mxu0 %vm505_vm2, %v1550_v18 }
  0x2d   : > { %1454 = vmatprep.mubr.msk.bf16.mxu1 %vm505_vm2, %v1551_v19 }
  0x33   : > { %1423 = vmatmul.mubr.msk.bf16.gmra.mrb[12].mxu0 %vm505_vm2, %v1552_v20 }
  0x34   : > { %1455 = vmatmul.mubr.msk.bf16.gmra.mrb[12].mxu1 %vm505_vm2, %v1553_v21  ;;  %1426 = vmatprep.mubr.msk.bf16.mxu0 %vm505_vm2, %v1554_v22 }
  0x35   : > { %1458 = vmatprep.mubr.msk.bf16.mxu1 %vm505_vm2, %v1555_v23 }
  0x3b   : > { %1427 = vmatmul.mubr.msk.bf16.gmra.mrb[16].mxu0 %vm505_vm2, %v1556_v24 }
  0x3c   : > { %1459 = vmatmul.mubr.msk.bf16.gmra.mrb[16].mxu1 %vm505_vm2, %v1557_v25  ;;  %1430 = vmatprep.mubr.msk.bf16.mxu0 %vm505_vm2, %v1558_v26 }
  0x3d   : > { %1462 = vmatprep.mubr.msk.bf16.mxu1 %vm505_vm2, %v1559_v27 }
  0x43   : > { %1431 = vmatmul.mubr.msk.bf16.gmra.mrb[20].mxu0 %vm505_vm2, %v1560_v28 }
  0x44   : > { %1463 = vmatmul.mubr.msk.bf16.gmra.mrb[20].mxu1 %vm505_vm2, %v1561_v29  ;;  %1434 = vmatprep.mubr.msk.bf16.mxu0 %vm505_vm2, %v1562_v30 }
  0x45   : > { %1466 = vmatprep.mubr.msk.bf16.mxu1 %vm505_vm2, %v1563_v31 }
  0x4b   : > { %1435 = vmatmul.mubr.msk.bf16.gmra.mrb[24].mxu0 %vm505_vm2, %v1564_v32 }
  0x4c   : > { %1467 = vmatmul.mubr.msk.bf16.gmra.mrb[24].mxu1 %vm505_vm2, %v1565_v33  ;;  %1438 = vmatprep.mubr.msk.bf16.mxu0 %vm505_vm2, %v1566_v34 }
  0x4d   : > { %1470 = vmatprep.mubr.msk.bf16.mxu1 %vm505_vm2, %v1567_v35 }
  0x53   : > { %1439 = vmatmul.mubr.msk.bf16.gmra.mrb[28].mxu0 %vm505_vm2, %v1568_v36 }
  0x54   : > { %1471 = vmatmul.mubr.msk.bf16.gmra.mrb[28].mxu1 %vm505_vm2, %v1569_v37 }
  0xee   : > { %v1412_v39 = vpop.f32.mrb[0].mxu0 }
  0xef   : > { %v652_v41 = vadd.f32 %v1412_v39, %v1814_v38  ;;  %v1444_v42 = vpop.f32.mrb[0].mxu1  ;;  %v643_v43 = vpop.f32.mrb[1].mxu0 }
  0xf0   : > { %v780_v44 = vadd.f32 %v1444_v42, %v1814_v38  ;;  %v644_v45 = vadd.f32 %v1814_v38, %v643_v43  ;;  %v771_v46 = vpop.f32.mrb[1].mxu1  ;;  %v1413_v47 = vpop.f32.mrb[2].mxu0 }
  0xf1   : > { %vm900_vm3 = vcmp.ge.f32.partialorder %v652_v41, 0.0  ;;  %v971_v48 = vmul.f32 %v1821_v40, %v652_v41  ;;  %v772_v49 = vadd.f32 %v1814_v38, %v771_v46  ;;  %v655_v50 = vadd.f32 %v1413_v47, %v1814_v38  ;;  %v1445_v51 = vpop.f32.mrb[2].mxu1  ;;  %v646_v52 = vpop.f32.mrb[3].mxu0 }
  0xf2   : > { %vm932_vm4 = vcmp.ge.f32.partialorder %v780_v44, 0.0  ;;  %v1003_v53 = vmul.f32 %v1821_v40, %v780_v44  ;;  %vm898_vm5 = vcmp.ge.f32.partialorder %v644_v45, 0.0  ;;  %v969_v54 = vmul.f32 %v1821_v40, %v644_v45  ;;  %v774_v55 = vpop.f32.mrb[3].mxu1 }
  0xf3   : > { %v1035_v56 = vsel %vm900_vm3, %v652_v41, %v971_v48  ;;  %vm930_vm6 = vcmp.ge.f32.partialorder %v772_v49, 0.0  ;;  %v1001_v57 = vmul.f32 %v1821_v40, %v772_v49  ;;  %vm901_vm7 = vcmp.ge.f32.partialorder %v655_v50, 0.0 }
  0xf4   : > { %1099 = vst [vmem:[%s1832_s26 + $0x10] sm:$0xff] %v1035_v56  ;;  %v1067_v58 = vsel %vm932_vm4, %v780_v44, %v1003_v53  ;;  %v1033_v59 = vsel %vm898_vm5, %v644_v45, %v969_v54  ;;  %v972_v60 = vmul.f32 %v1821_v40, %v655_v50  ;;  %v783_v61 = vadd.f32 %v1445_v51, %v1814_v38 }
  0xf5   : > { %1131 = vst [vmem:[%s1832_s26 + $0x110] sm:$0xff] %v1067_v58  ;;  %1097 = vst [vmem:[%s1832_s26] sm:$0xff] %v1033_v59  ;;  %v1065_v62 = vsel %vm930_vm6, %v772_v49, %v1001_v57  ;;  %v647_v63 = vadd.f32 %v1814_v38, %v646_v52  ;;  %v775_v0 = vadd.f32 %v1814_v38, %v774_v55 }
  0xf6   : > { %1129 = vst [vmem:[%s1832_s26 + $0x100] sm:$0xff] %v1065_v62  ;;  %v1036_v1 = vsel %vm901_vm7, %v655_v50, %v972_v60  ;;  %vm933_vm8 = vcmp.ge.f32.partialorder %v783_v61, 0.0  ;;  %v1004_v2 = vmul.f32 %v1821_v40, %v783_v61  ;;  %v1416_v3 = vpop.f32.mrb[4].mxu0 }
  0xf7   : > { %1100 = vst [vmem:[%s1832_s26 + $0x18] sm:$0xff] %v1036_v1  ;;  %vm899_vm9 = vcmp.ge.f32.partialorder %v647_v63, 0.0  ;;  %v970_v4 = vmul.f32 %v1821_v40, %v647_v63  ;;  %vm931_vm10 = vcmp.ge.f32.partialorder %v775_v0, 0.0  ;;  %v1002_v5 = vmul.f32 %v1821_v40, %v775_v0  ;;  %v1448_v6 = vpop.f32.mrb[4].mxu1  ;;  %v659_v7 = vpop.f32.mrb[5].mxu0 }
  0xf8   : > { %v1068_v8 = vsel %vm933_vm8, %v783_v61, %v1004_v2  ;;  %v668_v9 = vadd.f32 %v1416_v3, %v1814_v38  ;;  %v796_v10 = vadd.f32 %v1448_v6, %v1814_v38  ;;  %v660_v11 = vadd.f32 %v1814_v38, %v659_v7  ;;  %v787_v12 = vpop.f32.mrb[5].mxu1  ;;  %v1417_v13 = vpop.f32.mrb[6].mxu0 }
  0xf9   : > { %1132 = vst [vmem:[%s1832_s26 + $0x118] sm:$0xff] %v1068_v8  ;;  %v1034_v14 = vsel %vm899_vm9, %v647_v63, %v970_v4  ;;  %v1066_v15 = vsel %vm931_vm10, %v775_v0, %v1002_v5  ;;  %v788_v16 = vadd.f32 %v1814_v38, %v787_v12  ;;  %v671_v17 = vadd.f32 %v1417_v13, %v1814_v38  ;;  %v1449_v18 = vpop.f32.mrb[6].mxu1  ;;  %v662_v19 = vpop.f32.mrb[7].mxu0 }
  0xfa   : > { %1098 = vst [vmem:[%s1832_s26 + $0x8] sm:$0xff] %v1034_v14  ;;  %1130 = vst [vmem:[%s1832_s26 + $0x108] sm:$0xff] %v1066_v15  ;;  %vm904_vm11 = vcmp.ge.f32.partialorder %v668_v9, 0.0  ;;  %v975_v20 = vmul.f32 %v1821_v40, %v668_v9  ;;  %vm936_vm12 = vcmp.ge.f32.partialorder %v796_v10, 0.0  ;;  %v1007_v21 = vmul.f32 %v1821_v40, %v796_v10  ;;  %v790_v22 = vpop.f32.mrb[7].mxu1 }
  0xfb   : > { %vm902_vm13 = vcmp.ge.f32.partialorder %v660_v11, 0.0  ;;  %v973_v23 = vmul.f32 %v1821_v40, %v660_v11  ;;  %vm934_vm14 = vcmp.ge.f32.partialorder %v788_v16, 0.0  ;;  %v1005_v24 = vmul.f32 %v1821_v40, %v788_v16 }
  0xfc   : > { %v1039_v25 = vsel %vm904_vm11, %v668_v9, %v975_v20  ;;  %v1071_v26 = vsel %vm936_vm12, %v796_v10, %v1007_v21  ;;  %vm905_vm15 = vcmp.ge.f32.partialorder %v671_v17, 0.0  ;;  %v976_v27 = vmul.f32 %v1821_v40, %v671_v17 }
  0xfd   : > { %1103 = vst [vmem:[%s1832_s26 + $0x30] sm:$0xff] %v1039_v25  ;;  %1135 = vst [vmem:[%s1832_s26 + $0x130] sm:$0xff] %v1071_v26  ;;  %v1037_v28 = vsel %vm902_vm13, %v660_v11, %v973_v23  ;;  %v1069_v29 = vsel %vm934_vm14, %v788_v16, %v1005_v24  ;;  %v799_v30 = vadd.f32 %v1449_v18, %v1814_v38 }
  0xfe   : > { %v663_v31 = vadd.f32 %v1814_v38, %v662_v19  ;;  %1101 = vst [vmem:[%s1832_s26 + $0x20] sm:$0xff] %v1037_v28  ;;  %1133 = vst [vmem:[%s1832_s26 + $0x120] sm:$0xff] %v1069_v29  ;;  %v1040_v32 = vsel %vm905_vm15, %v671_v17, %v976_v27  ;;  %v791_v33 = vadd.f32 %v1814_v38, %v790_v22  ;;  %v1420_v34 = vpop.f32.mrb[8].mxu0 }
  0xff   : > { %1104 = vst [vmem:[%s1832_s26 + $0x38] sm:$0xff] %v1040_v32  ;;  %vm937_vm0 = vcmp.ge.f32.partialorder %v799_v30, 0.0  ;;  %v1008_v35 = vmul.f32 %v1821_v40, %v799_v30  ;;  %v1452_v37 = vpop.f32.mrb[8].mxu1  ;;  %v675_v39 = vpop.f32.mrb[9].mxu0  ;;  %v684_v42 = vadd.f32 %v1420_v34, %v1814_v38 }
 0x100   : > { %vm903_vm1 = vcmp.ge.f32.partialorder %v663_v31, 0.0  ;;  %v974_v36 = vmul.f32 %v1821_v40, %v663_v31  ;;  %vm935_vm2 = vcmp.ge.f32.partialorder %v791_v33, 0.0  ;;  %v1006_v41 = vmul.f32 %v1821_v40, %v791_v33  ;;  %v803_v44 = vpop.f32.mrb[9].mxu1  ;;  %v1421_v45 = vpop.f32.mrb[10].mxu0 }
 0x101   : > { %v812_v43 = vadd.f32 %v1452_v37, %v1814_v38  ;;  %v1072_v46 = vsel %vm937_vm0, %v799_v30, %v1008_v35  ;;  %v676_v48 = vadd.f32 %v1814_v38, %v675_v39  ;;  %v804_v49 = vadd.f32 %v1814_v38, %v803_v44  ;;  %v1453_v50 = vpop.f32.mrb[10].mxu1  ;;  %v678_v51 = vpop.f32.mrb[11].mxu0 }
 0x102   : > { %v1038_v47 = vsel %vm903_vm1, %v663_v31, %v974_v36  ;;  %1136 = vst [vmem:[%s1832_s26 + $0x138] sm:$0xff] %v1072_v46  ;;  %v1070_v52 = vsel %vm935_vm2, %v791_v33, %v1006_v41  ;;  %vm908_vm3 = vcmp.ge.f32.partialorder %v684_v42, 0.0  ;;  %v979_v53 = vmul.f32 %v1821_v40, %v684_v42  ;;  %v806_v54 = vpop.f32.mrb[11].mxu1 }
 0x103   : > { %1102 = vst [vmem:[%s1832_s26 + $0x28] sm:$0xff] %v1038_v47  ;;  %vm940_vm4 = vcmp.ge.f32.partialorder %v812_v43, 0.0  ;;  %1134 = vst [vmem:[%s1832_s26 + $0x128] sm:$0xff] %v1070_v52  ;;  %v1011_v55 = vmul.f32 %v1821_v40, %v812_v43  ;;  %vm906_vm5 = vcmp.ge.f32.partialorder %v676_v48, 0.0  ;;  %v977_v56 = vmul.f32 %v1821_v40, %v676_v48 }
 0x104   : > { %vm938_vm6 = vcmp.ge.f32.partialorder %v804_v49, 0.0  ;;  %v1043_v57 = vsel %vm908_vm3, %v684_v42, %v979_v53  ;;  %v1009_v58 = vmul.f32 %v1821_v40, %v804_v49  ;;  %v687_v59 = vadd.f32 %v1421_v45, %v1814_v38 }
 0x105   : > { %v815_v60 = vadd.f32 %v1453_v50, %v1814_v38  ;;  %1107 = vst [vmem:[%s1832_s26 + $0x50] sm:$0xff] %v1043_v57  ;;  %v1075_v61 = vsel %vm940_vm4, %v812_v43, %v1011_v55  ;;  %v1041_v62 = vsel %vm906_vm5, %v676_v48, %v977_v56  ;;  %v679_v63 = vadd.f32 %v1814_v38, %v678_v51 }
 0x106   : > { %v807_v0 = vadd.f32 %v1814_v38, %v806_v54  ;;  %1139 = vst [vmem:[%s1832_s26 + $0x150] sm:$0xff] %v1075_v61  ;;  %1105 = vst [vmem:[%s1832_s26 + $0x40] sm:$0xff] %v1041_v62  ;;  %v1073_v1 = vsel %vm938_vm6, %v804_v49, %v1009_v58  ;;  %vm909_vm7 = vcmp.ge.f32.partialorder %v687_v59, 0.0  ;;  %v980_v2 = vmul.f32 %v1821_v40, %v687_v59  ;;  %v1424_v3 = vpop.f32.mrb[12].mxu0 }
 0x107   : > { %vm941_vm8 = vcmp.ge.f32.partialorder %v815_v60, 0.0  ;;  %1137 = vst [vmem:[%s1832_s26 + $0x140] sm:$0xff] %v1073_v1  ;;  %v1012_v4 = vmul.f32 %v1821_v40, %v815_v60  ;;  %vm907_vm9 = vcmp.ge.f32.partialorder %v679_v63, 0.0  ;;  %v978_v5 = vmul.f32 %v1821_v40, %v679_v63  ;;  %v1456_v6 = vpop.f32.mrb[12].mxu1  ;;  %v691_v7 = vpop.f32.mrb[13].mxu0 }
 0x108   : > { %vm939_vm10 = vcmp.ge.f32.partialorder %v807_v0, 0.0  ;;  %v1044_v8 = vsel %vm909_vm7, %v687_v59, %v980_v2  ;;  %v1010_v9 = vmul.f32 %v1821_v40, %v807_v0  ;;  %v700_v10 = vadd.f32 %v1424_v3, %v1814_v38  ;;  %v819_v12 = vpop.f32.mrb[13].mxu1  ;;  %v1425_v13 = vpop.f32.mrb[14].mxu0 }
 0x109   : > { %v828_v11 = vadd.f32 %v1456_v6, %v1814_v38  ;;  %1108 = vst [vmem:[%s1832_s26 + $0x58] sm:$0xff] %v1044_v8  ;;  %v1076_v14 = vsel %vm941_vm8, %v815_v60, %v1012_v4  ;;  %v1042_v15 = vsel %vm907_vm9, %v679_v63, %v978_v5  ;;  %v692_v16 = vadd.f32 %v1814_v38, %v691_v7  ;;  %v1457_v18 = vpop.f32.mrb[14].mxu1  ;;  %v694_v19 = vpop.f32.mrb[15].mxu0 }
 0x10a   : > { %v820_v17 = vadd.f32 %v1814_v38, %v819_v12  ;;  %1140 = vst [vmem:[%s1832_s26 + $0x158] sm:$0xff] %v1076_v14  ;;  %1106 = vst [vmem:[%s1832_s26 + $0x48] sm:$0xff] %v1042_v15  ;;  %v1074_v20 = vsel %vm939_vm10, %v807_v0, %v1010_v9  ;;  %vm912_vm11 = vcmp.ge.f32.partialorder %v700_v10, 0.0  ;;  %v983_v21 = vmul.f32 %v1821_v40, %v700_v10  ;;  %v822_v22 = vpop.f32.mrb[15].mxu1 }
 0x10b   : > { %vm944_vm12 = vcmp.ge.f32.partialorder %v828_v11, 0.0  ;;  %1138 = vst [vmem:[%s1832_s26 + $0x148] sm:$0xff] %v1074_v20  ;;  %v1015_v23 = vmul.f32 %v1821_v40, %v828_v11  ;;  %vm910_vm13 = vcmp.ge.f32.partialorder %v692_v16, 0.0  ;;  %v981_v24 = vmul.f32 %v1821_v40, %v692_v16 }
 0x10c   : > { %vm942_vm14 = vcmp.ge.f32.partialorder %v820_v17, 0.0  ;;  %v1047_v25 = vsel %vm912_vm11, %v700_v10, %v983_v21  ;;  %v1013_v26 = vmul.f32 %v1821_v40, %v820_v17  ;;  %v703_v27 = vadd.f32 %v1425_v13, %v1814_v38 }
 0x10d   : > { %v831_v28 = vadd.f32 %v1457_v18, %v1814_v38  ;;  %1111 = vst [vmem:[%s1832_s26 + $0x70] sm:$0xff] %v1047_v25  ;;  %v1079_v29 = vsel %vm944_vm12, %v828_v11, %v1015_v23  ;;  %v1045_v30 = vsel %vm910_vm13, %v692_v16, %v981_v24  ;;  %v695_v31 = vadd.f32 %v1814_v38, %v694_v19 }
 0x10e   : > { %v823_v32 = vadd.f32 %v1814_v38, %v822_v22  ;;  %1143 = vst [vmem:[%s1832_s26 + $0x170] sm:$0xff] %v1079_v29  ;;  %1109 = vst [vmem:[%s1832_s26 + $0x60] sm:$0xff] %v1045_v30  ;;  %v1077_v33 = vsel %vm942_vm14, %v820_v17, %v1013_v26  ;;  %vm913_vm15 = vcmp.ge.f32.partialorder %v703_v27, 0.0  ;;  %v984_v34 = vmul.f32 %v1821_v40, %v703_v27  ;;  %v1428_v35 = vpop.f32.mrb[16].mxu0 }
 0x10f   : > { %vm945_vm0 = vcmp.ge.f32.partialorder %v831_v28, 0.0  ;;  %1141 = vst [vmem:[%s1832_s26 + $0x160] sm:$0xff] %v1077_v33  ;;  %v1016_v36 = vmul.f32 %v1821_v40, %v831_v28  ;;  %vm911_vm1 = vcmp.ge.f32.partialorder %v695_v31, 0.0  ;;  %v982_v37 = vmul.f32 %v1821_v40, %v695_v31  ;;  %v1460_v39 = vpop.f32.mrb[16].mxu1  ;;  %v707_v41 = vpop.f32.mrb[17].mxu0 }
 0x110   : > { %vm943_vm2 = vcmp.ge.f32.partialorder %v823_v32, 0.0  ;;  %v1048_v42 = vsel %vm913_vm15, %v703_v27, %v984_v34  ;;  %v1014_v43 = vmul.f32 %v1821_v40, %v823_v32  ;;  %v716_v44 = vadd.f32 %v1428_v35, %v1814_v38  ;;  %v835_v46 = vpop.f32.mrb[17].mxu1  ;;  %v1429_v47 = vpop.f32.mrb[18].mxu0 }
 0x111   : > { %v844_v45 = vadd.f32 %v1460_v39, %v1814_v38  ;;  %1112 = vst [vmem:[%s1832_s26 + $0x78] sm:$0xff] %v1048_v42  ;;  %v1080_v48 = vsel %vm945_vm0, %v831_v28, %v1016_v36  ;;  %v1046_v49 = vsel %vm911_vm1, %v695_v31, %v982_v37  ;;  %v708_v50 = vadd.f32 %v1814_v38, %v707_v41  ;;  %v1461_v52 = vpop.f32.mrb[18].mxu1  ;;  %v710_v53 = vpop.f32.mrb[19].mxu0 }
 0x112   : > { %v836_v51 = vadd.f32 %v1814_v38, %v835_v46  ;;  %1144 = vst [vmem:[%s1832_s26 + $0x178] sm:$0xff] %v1080_v48  ;;  %1110 = vst [vmem:[%s1832_s26 + $0x68] sm:$0xff] %v1046_v49  ;;  %v1078_v54 = vsel %vm943_vm2, %v823_v32, %v1014_v43  ;;  %vm916_vm3 = vcmp.ge.f32.partialorder %v716_v44, 0.0  ;;  %v987_v55 = vmul.f32 %v1821_v40, %v716_v44  ;;  %v838_v56 = vpop.f32.mrb[19].mxu1 }
 0x113   : > { %vm948_vm4 = vcmp.ge.f32.partialorder %v844_v45, 0.0  ;;  %1142 = vst [vmem:[%s1832_s26 + $0x168] sm:$0xff] %v1078_v54  ;;  %v1019_v57 = vmul.f32 %v1821_v40, %v844_v45  ;;  %vm914_vm5 = vcmp.ge.f32.partialorder %v708_v50, 0.0  ;;  %v985_v58 = vmul.f32 %v1821_v40, %v708_v50 }
 0x114   : > { %vm946_vm6 = vcmp.ge.f32.partialorder %v836_v51, 0.0  ;;  %v1051_v59 = vsel %vm916_vm3, %v716_v44, %v987_v55  ;;  %v1017_v60 = vmul.f32 %v1821_v40, %v836_v51  ;;  %v719_v61 = vadd.f32 %v1429_v47, %v1814_v38 }
 0x115   : > { %v847_v62 = vadd.f32 %v1461_v52, %v1814_v38  ;;  %1115 = vst [vmem:[%s1832_s26 + $0x90] sm:$0xff] %v1051_v59  ;;  %v1083_v63 = vsel %vm948_vm4, %v844_v45, %v1019_v57  ;;  %v1049_v0 = vsel %vm914_vm5, %v708_v50, %v985_v58  ;;  %v711_v1 = vadd.f32 %v1814_v38, %v710_v53 }
 0x116   : > { %v839_v2 = vadd.f32 %v1814_v38, %v838_v56  ;;  %1147 = vst [vmem:[%s1832_s26 + $0x190] sm:$0xff] %v1083_v63  ;;  %1113 = vst [vmem:[%s1832_s26 + $0x80] sm:$0xff] %v1049_v0  ;;  %v1081_v3 = vsel %vm946_vm6, %v836_v51, %v1017_v60  ;;  %vm917_vm7 = vcmp.ge.f32.partialorder %v719_v61, 0.0  ;;  %v988_v4 = vmul.f32 %v1821_v40, %v719_v61  ;;  %v1432_v5 = vpop.f32.mrb[20].mxu0 }
 0x117   : > { %vm949_vm8 = vcmp.ge.f32.partialorder %v847_v62, 0.0  ;;  %1145 = vst [vmem:[%s1832_s26 + $0x180] sm:$0xff] %v1081_v3  ;;  %v1020_v6 = vmul.f32 %v1821_v40, %v847_v62  ;;  %vm915_vm9 = vcmp.ge.f32.partialorder %v711_v1, 0.0  ;;  %v986_v7 = vmul.f32 %v1821_v40, %v711_v1  ;;  %v1464_v8 = vpop.f32.mrb[20].mxu1  ;;  %v723_v9 = vpop.f32.mrb[21].mxu0 }
 0x118   : > { %vm947_vm10 = vcmp.ge.f32.partialorder %v839_v2, 0.0  ;;  %v1052_v10 = vsel %vm917_vm7, %v719_v61, %v988_v4  ;;  %v1018_v11 = vmul.f32 %v1821_v40, %v839_v2  ;;  %v732_v12 = vadd.f32 %v1432_v5, %v1814_v38  ;;  %v851_v14 = vpop.f32.mrb[21].mxu1  ;;  %v1433_v15 = vpop.f32.mrb[22].mxu0 }
 0x119   : > { %v860_v13 = vadd.f32 %v1464_v8, %v1814_v38  ;;  %1116 = vst [vmem:[%s1832_s26 + $0x98] sm:$0xff] %v1052_v10  ;;  %v1084_v16 = vsel %vm949_vm8, %v847_v62, %v1020_v6  ;;  %v1050_v17 = vsel %vm915_vm9, %v711_v1, %v986_v7  ;;  %v724_v18 = vadd.f32 %v1814_v38, %v723_v9  ;;  %v1465_v20 = vpop.f32.mrb[22].mxu1  ;;  %v726_v21 = vpop.f32.mrb[23].mxu0 }
 0x11a   : > { %v852_v19 = vadd.f32 %v1814_v38, %v851_v14  ;;  %1148 = vst [vmem:[%s1832_s26 + $0x198] sm:$0xff] %v1084_v16  ;;  %1114 = vst [vmem:[%s1832_s26 + $0x88] sm:$0xff] %v1050_v17  ;;  %v1082_v22 = vsel %vm947_vm10, %v839_v2, %v1018_v11  ;;  %vm920_vm11 = vcmp.ge.f32.partialorder %v732_v12, 0.0  ;;  %v991_v23 = vmul.f32 %v1821_v40, %v732_v12  ;;  %v854_v24 = vpop.f32.mrb[23].mxu1 }
 0x11b   : > { %vm952_vm12 = vcmp.ge.f32.partialorder %v860_v13, 0.0  ;;  %1146 = vst [vmem:[%s1832_s26 + $0x188] sm:$0xff] %v1082_v22  ;;  %v1023_v25 = vmul.f32 %v1821_v40, %v860_v13  ;;  %vm918_vm13 = vcmp.ge.f32.partialorder %v724_v18, 0.0  ;;  %v989_v26 = vmul.f32 %v1821_v40, %v724_v18 }
 0x11c   : > { %vm950_vm14 = vcmp.ge.f32.partialorder %v852_v19, 0.0  ;;  %v1055_v27 = vsel %vm920_vm11, %v732_v12, %v991_v23  ;;  %v1021_v28 = vmul.f32 %v1821_v40, %v852_v19  ;;  %v735_v29 = vadd.f32 %v1433_v15, %v1814_v38 }
 0x11d   : > { %v863_v30 = vadd.f32 %v1465_v20, %v1814_v38  ;;  %1119 = vst [vmem:[%s1832_s26 + $0xb0] sm:$0xff] %v1055_v27  ;;  %v1087_v31 = vsel %vm952_vm12, %v860_v13, %v1023_v25  ;;  %v1053_v32 = vsel %vm918_vm13, %v724_v18, %v989_v26  ;;  %v727_v33 = vadd.f32 %v1814_v38, %v726_v21 }
 0x11e   : > { %v855_v34 = vadd.f32 %v1814_v38, %v854_v24  ;;  %1151 = vst [vmem:[%s1832_s26 + $0x1b0] sm:$0xff] %v1087_v31  ;;  %1117 = vst [vmem:[%s1832_s26 + $0xa0] sm:$0xff] %v1053_v32  ;;  %v1085_v35 = vsel %vm950_vm14, %v852_v19, %v1021_v28  ;;  %vm921_vm15 = vcmp.ge.f32.partialorder %v735_v29, 0.0  ;;  %v992_v36 = vmul.f32 %v1821_v40, %v735_v29  ;;  %v1436_v37 = vpop.f32.mrb[24].mxu0 }
 0x11f   : > { %vm953_vm0 = vcmp.ge.f32.partialorder %v863_v30, 0.0  ;;  %1149 = vst [vmem:[%s1832_s26 + $0x1a0] sm:$0xff] %v1085_v35  ;;  %v1024_v39 = vmul.f32 %v1821_v40, %v863_v30  ;;  %vm919_vm1 = vcmp.ge.f32.partialorder %v727_v33, 0.0  ;;  %v990_v41 = vmul.f32 %v1821_v40, %v727_v33  ;;  %v1468_v42 = vpop.f32.mrb[24].mxu1  ;;  %v739_v43 = vpop.f32.mrb[25].mxu0 }
 0x120   : > { %vm951_vm2 = vcmp.ge.f32.partialorder %v855_v34, 0.0  ;;  %v1056_v44 = vsel %vm921_vm15, %v735_v29, %v992_v36  ;;  %v1022_v45 = vmul.f32 %v1821_v40, %v855_v34  ;;  %v748_v46 = vadd.f32 %v1436_v37, %v1814_v38  ;;  %v867_v48 = vpop.f32.mrb[25].mxu1  ;;  %v1437_v49 = vpop.f32.mrb[26].mxu0 }
 0x121   : > { %v876_v47 = vadd.f32 %v1468_v42, %v1814_v38  ;;  %1120 = vst [vmem:[%s1832_s26 + $0xb8] sm:$0xff] %v1056_v44  ;;  %v1088_v50 = vsel %vm953_vm0, %v863_v30, %v1024_v39  ;;  %v1054_v51 = vsel %vm919_vm1, %v727_v33, %v990_v41  ;;  %v740_v52 = vadd.f32 %v1814_v38, %v739_v43  ;;  %v1469_v54 = vpop.f32.mrb[26].mxu1  ;;  %v742_v55 = vpop.f32.mrb[27].mxu0 }
 0x122   : > { %v868_v53 = vadd.f32 %v1814_v38, %v867_v48  ;;  %1152 = vst [vmem:[%s1832_s26 + $0x1b8] sm:$0xff] %v1088_v50  ;;  %1118 = vst [vmem:[%s1832_s26 + $0xa8] sm:$0xff] %v1054_v51  ;;  %v1086_v56 = vsel %vm951_vm2, %v855_v34, %v1022_v45  ;;  %vm924_vm3 = vcmp.ge.f32.partialorder %v748_v46, 0.0  ;;  %v995_v57 = vmul.f32 %v1821_v40, %v748_v46  ;;  %v870_v58 = vpop.f32.mrb[27].mxu1 }
 0x123   : > { %vm956_vm4 = vcmp.ge.f32.partialorder %v876_v47, 0.0  ;;  %1150 = vst [vmem:[%s1832_s26 + $0x1a8] sm:$0xff] %v1086_v56  ;;  %v1027_v59 = vmul.f32 %v1821_v40, %v876_v47  ;;  %vm922_vm5 = vcmp.ge.f32.partialorder %v740_v52, 0.0  ;;  %v993_v60 = vmul.f32 %v1821_v40, %v740_v52 }
 0x124   : > { %vm954_vm6 = vcmp.ge.f32.partialorder %v868_v53, 0.0  ;;  %v1059_v61 = vsel %vm924_vm3, %v748_v46, %v995_v57  ;;  %v1025_v62 = vmul.f32 %v1821_v40, %v868_v53  ;;  %v751_v63 = vadd.f32 %v1437_v49, %v1814_v38 }
 0x125   : > { %v879_v0 = vadd.f32 %v1469_v54, %v1814_v38  ;;  %1123 = vst [vmem:[%s1832_s26 + $0xd0] sm:$0xff] %v1059_v61  ;;  %v1091_v1 = vsel %vm956_vm4, %v876_v47, %v1027_v59  ;;  %v1057_v2 = vsel %vm922_vm5, %v740_v52, %v993_v60  ;;  %v743_v3 = vadd.f32 %v1814_v38, %v742_v55 }
 0x126   : > { %v871_v4 = vadd.f32 %v1814_v38, %v870_v58  ;;  %1155 = vst [vmem:[%s1832_s26 + $0x1d0] sm:$0xff] %v1091_v1  ;;  %1121 = vst [vmem:[%s1832_s26 + $0xc0] sm:$0xff] %v1057_v2  ;;  %v1089_v5 = vsel %vm954_vm6, %v868_v53, %v1025_v62  ;;  %vm925_vm7 = vcmp.ge.f32.partialorder %v751_v63, 0.0  ;;  %v996_v6 = vmul.f32 %v1821_v40, %v751_v63  ;;  %v1440_v7 = vpop.f32.mrb[28].mxu0 }
 0x127   : > { %vm957_vm8 = vcmp.ge.f32.partialorder %v879_v0, 0.0  ;;  %1153 = vst [vmem:[%s1832_s26 + $0x1c0] sm:$0xff] %v1089_v5  ;;  %v1028_v8 = vmul.f32 %v1821_v40, %v879_v0  ;;  %vm923_vm9 = vcmp.ge.f32.partialorder %v743_v3, 0.0  ;;  %v994_v9 = vmul.f32 %v1821_v40, %v743_v3  ;;  %v1472_v10 = vpop.f32.mrb[28].mxu1  ;;  %v755_v11 = vpop.f32.mrb[29].mxu0 }
 0x128   : > { %vm955_vm10 = vcmp.ge.f32.partialorder %v871_v4, 0.0  ;;  %v1060_v12 = vsel %vm925_vm7, %v751_v63, %v996_v6  ;;  %v1026_v13 = vmul.f32 %v1821_v40, %v871_v4  ;;  %v764_v14 = vadd.f32 %v1440_v7, %v1814_v38  ;;  %v883_v16 = vpop.f32.mrb[29].mxu1  ;;  %v1441_v17 = vpop.f32.mrb[30].mxu0 }
 0x129   : > { %v892_v15 = vadd.f32 %v1472_v10, %v1814_v38  ;;  %1124 = vst [vmem:[%s1832_s26 + $0xd8] sm:$0xff] %v1060_v12  ;;  %v1092_v18 = vsel %vm957_vm8, %v879_v0, %v1028_v8  ;;  %v1058_v19 = vsel %vm923_vm9, %v743_v3, %v994_v9  ;;  %v756_v20 = vadd.f32 %v1814_v38, %v755_v11  ;;  %v1473_v22 = vpop.f32.mrb[30].mxu1  ;;  %v758_v23 = vpop.f32.mrb[31].mxu0 }
 0x12a   : > { %v884_v21 = vadd.f32 %v1814_v38, %v883_v16  ;;  %1156 = vst [vmem:[%s1832_s26 + $0x1d8] sm:$0xff] %v1092_v18  ;;  %1122 = vst [vmem:[%s1832_s26 + $0xc8] sm:$0xff] %v1058_v19  ;;  %v1090_v24 = vsel %vm955_vm10, %v871_v4, %v1026_v13  ;;  %vm928_vm11 = vcmp.ge.f32.partialorder %v764_v14, 0.0  ;;  %v999_v25 = vmul.f32 %v1821_v40, %v764_v14  ;;  %v886_v26 = vpop.f32.mrb[31].mxu1 }
 0x12b   : > { %vm960_vm12 = vcmp.ge.f32.partialorder %v892_v15, 0.0  ;;  %1154 = vst [vmem:[%s1832_s26 + $0x1c8] sm:$0xff] %v1090_v24  ;;  %v1031_v27 = vmul.f32 %v1821_v40, %v892_v15  ;;  %vm926_vm13 = vcmp.ge.f32.partialorder %v756_v20, 0.0  ;;  %v997_v28 = vmul.f32 %v1821_v40, %v756_v20 }
 0x12c   : > { %vm958_vm14 = vcmp.ge.f32.partialorder %v884_v21, 0.0  ;;  %v1063_v29 = vsel %vm928_vm11, %v764_v14, %v999_v25  ;;  %v1029_v30 = vmul.f32 %v1821_v40, %v884_v21  ;;  %v767_v31 = vadd.f32 %v1441_v17, %v1814_v38 }
 0x12d   : > { %v895_v32 = vadd.f32 %v1473_v22, %v1814_v38  ;;  %1127 = vst [vmem:[%s1832_s26 + $0xf0] sm:$0xff] %v1063_v29  ;;  %v1095_v33 = vsel %vm960_vm12, %v892_v15, %v1031_v27  ;;  %v1061_v34 = vsel %vm926_vm13, %v756_v20, %v997_v28  ;;  %v759_v35 = vadd.f32 %v1814_v38, %v758_v23 }
 0x12e   : > { %v887_v36 = vadd.f32 %v1814_v38, %v886_v26  ;;  %1159 = vst [vmem:[%s1832_s26 + $0x1f0] sm:$0xff] %v1095_v33  ;;  %1125 = vst [vmem:[%s1832_s26 + $0xe0] sm:$0xff] %v1061_v34  ;;  %v1093_v37 = vsel %vm958_vm14, %v884_v21, %v1029_v30  ;;  %vm929_vm15 = vcmp.ge.f32.partialorder %v767_v31, 0.0  ;;  %v1000_v39 = vmul.f32 %v1821_v40, %v767_v31 }
 0x12f   : > { %vm961_vm0 = vcmp.ge.f32.partialorder %v895_v32, 0.0  ;;  %1157 = vst [vmem:[%s1832_s26 + $0x1e0] sm:$0xff] %v1093_v37  ;;  %v1032_v41 = vmul.f32 %v1821_v40, %v895_v32  ;;  %vm927_vm1 = vcmp.ge.f32.partialorder %v759_v35, 0.0  ;;  %v998_v38 = vmul.f32 %v1821_v40, %v759_v35 }
 0x130   : > { %vm959_vm2 = vcmp.ge.f32.partialorder %v887_v36, 0.0  ;;  %v1064_v42 = vsel %vm929_vm15, %v767_v31, %v1000_v39  ;;  %v1030_v43 = vmul.f32 %v1821_v40, %v887_v36 }
 0x131   : > { %1128 = vst [vmem:[%s1832_s26 + $0xf8] sm:$0xff] %v1064_v42  ;;  %v1096_v44 = vsel %vm961_vm0, %v895_v32, %v1032_v41  ;;  %v1062_v45 = vsel %vm927_vm1, %v759_v35, %v998_v38 }
 0x132   : > { %1160 = vst [vmem:[%s1832_s26 + $0x1f8] sm:$0xff] %v1096_v44  ;;  %1126 = vst [vmem:[%s1832_s26 + $0xe8] sm:$0xff] %v1062_v45  ;;  %v1094_v46 = vsel %vm959_vm2, %v887_v36, %v1030_v43 }
 0x133   : > { %1158 = vst [vmem:[%s1832_s26 + $0x1e8] sm:$0xff] %v1094_v46 }
 0x134   : > { %1583 = shalt.err (!%p1580_p5)
}
 0x135   : > { %s1584_s12 = scalar_lea.hbm %s2028_s6, 8192  ;;  %s1588_s21 = scalar_lea.hbm %s2088_s4, 401408 }
 0x136   : > { %p1585_p6 = scmp.ne.s32.totalorder %s2028_s6, %s1584_s12  ;;  %p1589_p10 = scmp.lt.u32.totalorder %s2028_s6, %s2088_s4 }
 0x137   : > { %p1590_p11 = scmp.lt.u32.totalorder %s1588_s21, %s1584_s12  ;;  %p1592_p13 = scmp.lt.u32.totalorder %s1584_s12, %s2028_s6 }
 0x138   : > { %p1586_p7 = pnand %p1585_p6, %p1719_p4 }
 0x139   : > { %p1591_p12 = por %p1590_p11, %p1589_p10 }
 0x13a   : > { %p1587_p9 = pneg %p1586_p7 }
 0x13b   : > { %p1593_p0 = por %p1592_p13, %p1591_p12 }
 0x13d   : > { %p1594_p1 = pnand %p1593_p0, %p1587_p9 }
 0x13f   : > { %1597 = shalt.err (!%p1594_p1)
}
 0x140   : > { %s1652_s26 = smov 128   ;;  %s1653_s29 = smov 8  }
 0x141   : > { %1478 = dma.vmem_to_hbm [thread:$0]  (%p1719_p4), %s2030_s30, 8192, %s2028_s6, %s2038_s7, %s1652_s26, %s1652_s26, %s1653_s29  }
 0x142 PF: > { %p1484_p2 = scmp.ge.s32.totalorder %s1648_s20, 2  ;;  %s1191_s18 = sand.u32 1, %s1628_s15  }
 0x143   : > { %s1192_s5 = scalar_lea.sflag [#allocation3], %s1191_s18 }
 0x144   : > { %p1481_p3 = pnand %p1484_p2, %p1726_p8 }
 0x146   : > { %1623 = dma.done.wait (!%p1481_p3), %s1192_s5, 8192  }
 0x147   : > { %1625 = vsyncadd (!%p1481_p3), %s1192_s5, 4294959104  ;;  %s17_s20 = sadd.s32 1, %s1648_s20   ;;  %s2091_s15 = smov %s1632_s16 }
 0x148   : > { %p14_p5 = scmp.ge.s32.totalorder %s17_s20, 51   ;;  %s2092_s16 = smov %s1636_s17 }
 0x149   : > { %s2093_s17 = smov %s1732_s28  ;;  %s2094_s18 = smov %s1644_s19 }
 0x14a   : > { %s2095_s19 = smov %s2097_s23  ;;  %16 = sbr.rel (!%p14_p5) target bundleno = 4 (0x4), region = 80 }
 0x151   :  { %1197 = vsyncpa [#allocation3], 1 }
 0x152   :  { %1199 = vsyncpa [#allocation3 + $0x1], 1 }

</bundles_post_ra>
